<compile_context>
chip_gen: v6e
topology: v6e:2x2x1
jax: 0.10.0
libtpu: 0.0.40
codegen_flags: <defaults>
</compile_context>

<pallas_src>
import functools

import jax
import jax.numpy as jnp
from jax.experimental import pallas as pl
from jax.experimental.pallas import tpu as pltpu

TEMPERATURE = 1.0
BN_EPS = 1e-5


def _round_up(v, m):
    return -(-v // m) * m


# ----------------------------------------------------------------------------
# Kernel
# ----------------------------------------------------------------------------
def _attention_kernel(x_ref, fcw_ref, bns_ref, bnb_ref, wall_ref, ball_ref,
                      out_ref, acc_ref, *, hw, hw_tile, lane_acc,
                      n_sig, n_ke, inv_t):
    """grid = (batch blocks [parallel], HW blocks [arbitrary / reduction])."""
    k = pl.program_id(1)
    n_chunks = hw_tile // lane_acc          # static
    n_full = hw // hw_tile                  # static: number of full HW tiles
    has_tail = (hw % hw_tile) != 0          # static

    # ---- init accumulator at the start of each batch-block's reduction ----
    @pl.when(k == 0)
    def _():
        acc_ref[...] = jnp.zeros_like(acc_ref)

    # ---- hot loop: lane-shaped partial sums, plain VPU vreg adds -----------
    def add_full_tile():
        for j in range(n_chunks):
            acc_ref[...] += x_ref[:, :, j * lane_acc:(j + 1) * lane_acc
                                  ].astype(jnp.float32)

    if not has_tail:
        add_full_tile()
    else:
        @pl.when(k < n_full)                 # unmasked path: all full tiles
        def _():
            add_full_tile()

        @pl.when(k == n_full)                # masked path: final partial tile only
        def _():
            base = n_full * hw_tile          # static
            for j in range(n_chunks):
                lo = base + j * lane_acc
                if lo >= hw:
                    break                    # statically skip fully-OOB chunks
                v = x_ref[:, :, j * lane_acc:(j + 1) * lane_acc
                          ].astype(jnp.float32)
                if lo + lane_acc > hw:       # only the straddling chunk is masked
                    lane = jax.lax.broadcasted_iota(jnp.int32, v.shape, 2)
                    v = jnp.where(lane < (hw - lo), v, 0.0)
                acc_ref[...] += v

    # ---- epilogue: one cross-lane reduce + fc + BN(eval) + ReLU + heads ----
    @pl.when(k == pl.num_programs(1) - 1)
    def _():
        pooled = jnp.sum(acc_ref[...], axis=-1) * jnp.float32(1.0 / hw)  # (b, Cin)
        h = jnp.dot(pooled, fcw_ref[...], preferred_element_type=jnp.float32)
        h = jnp.maximum(h * bns_ref[...] + bnb_ref[...], 0.0)            # (b, A)

        logits = (jnp.dot(h, wall_ref[...], preferred_element_type=jnp.float32)
                  + ball_ref[...]) * jnp.float32(inv_t)                  # (b, Npad)

        act = jax.nn.sigmoid(logits)          # sigmoid heads (and padding lanes)
        if n_ke > 0:
            lane = jax.lax.broadcasted_iota(jnp.int32, logits.shape, 1)
            is_ke = (lane >= n_sig) & (lane < n_sig + n_ke)
            z = jnp.where(is_ke, logits, jnp.float32(-1e30))
            z = z - jnp.max(z, axis=-1, keepdims=True)
            e = jnp.exp(z)                    # non-kernel lanes underflow to 0
            # exact reciprocal: runs once per batch block, cost is negligible
            act = jnp.where(is_ke, e / jnp.sum(e, axis=-1, keepdims=True), act)

        out_ref[0] = act                      # single lane-dense (b_tile,128k) store


# ----------------------------------------------------------------------------
# Parameter init (mirrors the PyTorch module's _initialize_weights)
# ----------------------------------------------------------------------------
def init_params(key, in_planes, out_planes, kernel_size, kernel_num, groups=1,
                reduction=0.0625, min_channel=16):
    attn_ch = max(int(in_planes * reduction), min_channel)
    use_filter = not (in_planes == groups and in_planes == out_planes)
    use_spatial = kernel_size != 1
    use_kernel = kernel_num != 1

    ks = jax.random.split(key, 5)

    def kaiming_fan_out(k, out_c, in_c):
        # kaiming_normal_(mode='fan_out', 'relu') for 1x1 conv: std = sqrt(2/out_c)
        std = (2.0 / out_c) ** 0.5
        return jax.random.normal(k, (out_c, in_c), jnp.float32) * std

    fc_wT = kaiming_fan_out(ks[0], attn_ch, in_planes).T          # (Cin, A)

    # Fused head weights, columns ordered: channel | [filter] | [spatial] | [kernel]
    cols = [kaiming_fan_out(ks[1], in_planes, attn_ch).T]         # channel
    n_sig = in_planes
    if use_filter:
        cols.append(kaiming_fan_out(ks[2], out_planes, attn_ch).T)
        n_sig += out_planes
    if use_spatial:
        cols.append(kaiming_fan_out(ks[3], kernel_size * kernel_size, attn_ch).T)
        n_sig += kernel_size * kernel_size
    n_ke = kernel_num if use_kernel else 0
    if use_kernel:
        cols.append(kaiming_fan_out(ks[4], kernel_num, attn_ch).T)

    n_total = n_sig + n_ke
    n_pad = max(128, _round_up(n_total, 128))                     # lane-dense
    w_all = jnp.concatenate(cols, axis=1)
    w_all = jnp.pad(w_all, ((0, 0), (0, n_pad - n_total)))
    b_all = jnp.zeros((1, n_pad), jnp.float32)                    # conv biases = 0

    return {
        "attn_ch": attn_ch,
        "fc_wT": fc_wT,
        # TODO(synk): fold real trained BN running stats here; this is fresh
        # eval-mode BN (mean=0, var=1, gamma=1, beta=0).
        "bn_scale": jnp.full((1, attn_ch), 1.0 / (1.0 + BN_EPS) ** 0.5, jnp.float32),
        "bn_bias": jnp.zeros((1, attn_ch), jnp.float32),
        "w_all": w_all,
        "b_all": b_all,
        "n_sig": n_sig,
        "n_pad": n_pad,
        "use_filter": use_filter,
        "use_spatial": use_spatial,
        "use_kernel": use_kernel,
    }


# ----------------------------------------------------------------------------
# Tiling helpers (generation- and dtype-aware)
# ----------------------------------------------------------------------------
def _sublane_pack(dtype):
    # packed sublane count: 8 for 32-bit, 16 for 16-bit, 32 for 8-bit dtypes
    return max(8, 32 // jnp.dtype(dtype).itemsize)


def _vmem_capacity_bytes():
    try:
        return int(pltpu.get_tpu_info().vmem_capacity_bytes)
    except Exception:
        return 128 << 20


def _is_two_core_part(vmem_cap):
    """Heuristic: v7x has 2 TensorCores per chip and 64 MiB VMEM per core."""
    try:
        kind = jax.devices()[0].device_kind.lower()
        if "v7" in kind or "7x" in kind:
            return True
    except Exception:
        pass
    return vmem_cap <= (64 << 20)


def _pick_b_tile(B, two_core):
    # Aim for b_tile in [8, 16]: full (8,128) output vregs and a sane MXU M.
    # On a 2-TensorCore part keep >= 2 batch blocks so "parallel" can shard.
    cap = max(1, B // 2) if two_core else B
    target = min(cap, 16)
    b_tile = 1
    for d in range(1, target + 1):
        if B % d == 0:
            b_tile = d
    return b_tile


def _pick_hw_tile(hw, c_in, b_tile, dtype, per_buf_bytes, max_lanes=8192):
    """HW tile: multiple of 128 (or full extent) sized from a per-generation
    VMEM budget so each grid step moves multiple MiB of x."""
    itemsize = jnp.dtype(dtype).itemsize
    c_pad = _round_up(c_in, _sublane_pack(dtype))
    lane_bytes = max(1, b_tile * c_pad * itemsize)
    budget_lanes = (per_buf_bytes // lane_bytes) // 128 * 128
    # keep each strided DMA row >= ~1 KiB (matters for bf16/int8 inputs)
    min_lanes = _round_up(max(128, 1024 // itemsize), 128)
    tile = int(max(min_lanes, min(max_lanes, budget_lanes)))
    if hw <= tile:
        return hw
    # prefer a tile that divides HW (skips the tail-mask path) when one exists
    for t in range(tile, max(127, tile // 2), -128):
        if hw % t == 0:
            return t
    return tile


def _split_heads(flat, params, B, in_planes, out_planes, kernel_size, kernel_num):
    """Slice the packed (B, n_sig+n_ke) activations into the 4 PyTorch outputs."""
    off = 0
    ch = flat[:, off:off + in_planes].reshape(B, -1, 1, 1)
    off += in_planes
    if params["use_filter"]:
        fi = flat[:, off:off + out_planes].reshape(B, -1, 1, 1)
        off += out_planes
    else:
        fi = 1.0
    if params["use_spatial"]:
        kk = kernel_size * kernel_size
        sp = flat[:, off:off + kk].reshape(B, 1, 1, 1, kernel_size, kernel_size)
        off += kk
    else:
        sp = 1.0
    if params["use_kernel"]:
        ke = flat[:, off:off + kernel_num].reshape(B, -1, 1, 1, 1, 1)
    else:
        ke = 1.0
    return ch, fi, sp, ke


# ----------------------------------------------------------------------------
# Public wrapper
# ----------------------------------------------------------------------------
def odconv_attention(x, params, in_planes, out_planes, kernel_size, kernel_num,
                     groups=1, b_tile=None, hw_tile=None, x_buffers=None):
    B, C_in, H, W = x.shape
    assert C_in == in_planes
    HW = H * W
    x3 = x.reshape(B, C_in, HW)                   # native dtype, no upcast

    A = params["attn_ch"]
    n_pad = params["n_pad"]
    n_sig = params["n_sig"]
    n_ke = kernel_num if params["use_kernel"] else 0

    # --- generation-aware budgets ------------------------------------------
    vmem_cap = _vmem_capacity_bytes()             # 64 MiB on v7x, 128 MiB v5e/v6e
    two_core = _is_two_core_part(vmem_cap)
    stream_budget = max(8 << 20, vmem_cap // 4)   # ~25% of VMEM for the x stream
    n_bufs = max(2, x_buffers or 2)
    per_buf_bytes = stream_budget // n_bufs

    if b_tile is None:
        b_tile = _pick_b_tile(B, two_core)
    assert B % b_tile == 0
    if hw_tile is None:
        hw_tile = _pick_hw_tile(HW, C_in, b_tile, x3.dtype, per_buf_bytes)
    assert hw_tile == HW or hw_tile % 128 == 0
    lane_acc = 128 if hw_tile % 128 == 0 else hw_tile

    grid = (B // b_tile, pl.cdiv(HW, hw_tile))

    kernel = functools.partial(
        _attention_kernel, hw=HW, hw_tile=hw_tile, lane_acc=lane_acc,
        n_sig=n_sig, n_ke=n_ke, inv_t=1.0 / TEMPERATURE)

    # Parameters: full-array blocks with a constant index_map -> DMA'd once,
    # resident across the whole grid.
    def const_spec(shape):
        return pl.BlockSpec(shape, lambda bi, k: tuple(0 for _ in shape))

    if x_buffers is None:
        x_spec = pl.BlockSpec((b_tile, C_in, hw_tile), lambda bi, k: (bi, 0, k))
    else:
        # Optional tuning knob (e.g. Buffered(3) on v7x if DMA gaps stay exposed).
        x_spec = pl.BlockSpec((b_tile, C_in, hw_tile), lambda bi, k: (bi, 0, k),
                              pipeline_mode=pl.Buffered(x_buffers))
    out_spec = pl.BlockSpec((1, b_tile, n_pad), lambda bi, k: (bi, 0, 0))

    # --- declared VMEM limit from the actual (dtype-aware) footprint ---------
    itemsize = x3.dtype.itemsize
    c_pad_x = _round_up(C_in, _sublane_pack(x3.dtype))
    x_tile_bytes = b_tile * c_pad_x * _round_up(hw_tile, 128) * itemsize
    a_lane = _round_up(A, 128)
    param_bytes = 4 * (_round_up(C_in, 8) * a_lane + 2 * 8 * a_lane
                       + _round_up(A, 8) * n_pad + 8 * n_pad)
    out_tile_bytes = _round_up(b_tile, 8) * n_pad * 4
    acc_bytes = b_tile * _round_up(C_in, 8) * _round_up(lane_acc, 128) * 4
    vmem_limit = (n_bufs * x_tile_bytes + 2 * param_bytes + 2 * out_tile_bytes
                  + acc_bytes + (4 << 20))
    vmem_limit = int(min(max(vmem_limit, 16 << 20), int(vmem_cap * 0.75)))

    out3d = pl.pallas_call(
        kernel,
        out_shape=jax.ShapeDtypeStruct((B // b_tile, b_tile, n_pad), jnp.float32),
        grid=grid,
        in_specs=[
            x_spec,
            const_spec((C_in, A)),      # fc weight (transposed)
            const_spec((1, A)),         # bn scale
            const_spec((1, A)),         # bn bias
            const_spec((A, n_pad)),     # fused head weights
            const_spec((1, n_pad)),     # fused head biases
        ],
        out_specs=out_spec,
        scratch_shapes=[pltpu.VMEM((b_tile, C_in, lane_acc), jnp.float32)],
        compiler_params=pltpu.CompilerParams(
            dimension_semantics=("parallel", "arbitrary"),
            vmem_limit_bytes=vmem_limit,
        ),
    )(x3, params["fc_wT"], params["bn_scale"], params["bn_bias"],
      params["w_all"], params["b_all"])

    flat = out3d.reshape(B, n_pad)[:, :n_sig + n_ke]
    return _split_heads(flat, params, B, in_planes, out_planes,
                        kernel_size, kernel_num)


# ----------------------------------------------------------------------------
# Pure-JAX reference for validation
# ----------------------------------------------------------------------------
def _reference(x, params, in_planes, out_planes, kernel_size, kernel_num):
    B, C, H, W = x.shape
    pooled = jnp.mean(x.reshape(B, C, H * W).astype(jnp.float32), axis=-1)
    h = pooled @ params["fc_wT"]
    h = jnp.maximum(h * params["bn_scale"] + params["bn_bias"], 0.0)
    n_sig = params["n_sig"]
    n_ke = kernel_num if params["use_kernel"] else 0
    logits = (h @ params["w_all"][:, :n_sig + n_ke]
              + params["b_all"][:, :n_sig + n_ke]) / TEMPERATURE
    parts = [jax.nn.sigmoid(logits[:, :n_sig])]
    if n_ke:
        parts.append(jax.nn.softmax(logits[:, n_sig:], axis=-1))
    flat = jnp.concatenate(parts, axis=-1)
    return _split_heads(flat, params, B, in_planes, out_planes,
                        kernel_size, kernel_num)


def _check(outs, refs, rtol=1e-4, atol=1e-5):
    for o, r in zip(outs, refs):
        if isinstance(r, float):
            assert o == r, (o, r)
            continue
        assert o.shape == r.shape, (o.shape, r.shape)
        err = float(jnp.max(jnp.abs(o - r)))
        assert jnp.allclose(o, r, rtol=rtol, atol=atol), err


if __name__ == "__main__":
    key = jax.random.PRNGKey(0)
    k1, k2, k3, k4 = jax.random.split(key, 4)

    # ---- Test 1: auto tiling, f32, all four heads active -------------------
    in_planes, out_planes, kernel_size, kernel_num, groups = 4, 8, 3, 4, 1
    B, H, W = 2, 16, 16
    x = jax.random.normal(k1, (B, in_planes, H, W), jnp.float32)
    params = init_params(k2, in_planes, out_planes, kernel_size, kernel_num, groups)
    outs = jax.block_until_ready(
        odconv_attention(x, params, in_planes, out_planes, kernel_size,
                         kernel_num, groups))
    _check(outs, _reference(x, params, in_planes, out_planes, kernel_size, kernel_num))

    # ---- Test 2: explicit small tiles -> exercises the pipelined HW
    # reduction with a masked tail tile (HW=144, hw_tile=128), bf16 input, and
    # the skip() paths (filter & spatial heads return 1.0) -------------------
    in_planes2 = out_planes2 = groups2 = 20
    kernel_size2, kernel_num2 = 1, 4
    B2, H2, W2 = 4, 12, 12
    x2 = jax.random.normal(k3, (B2, in_planes2, H2, W2),
                           jnp.float32).astype(jnp.bfloat16)
    params2 = init_params(k4, in_planes2, out_planes2, kernel_size2, kernel_num2,
                          groups2)
    outs2 = jax.block_until_ready(
        odconv_attention(x2, params2, in_planes2, out_planes2, kernel_size2,
                         kernel_num2, groups2, b_tile=2, hw_tile=128))
    _check(outs2, _reference(x2, params2, in_planes2, out_planes2, kernel_size2,
                             kernel_num2))

    print("KERNEL_OK")
</pallas_src>

<mosaic_0001>
module attributes {stable_mosaic.version = 11 : i64} {
  func.func @_attention_kernel(%arg0: i32, %arg1: i32, %arg2: memref<2x4x256xf32, #tpu.memory_space<vmem>>, %arg3: memref<4x16xf32, #tpu.memory_space<vmem>>, %arg4: memref<1x16xf32, #tpu.memory_space<vmem>>, %arg5: memref<1x16xf32, #tpu.memory_space<vmem>>, %arg6: memref<16x128xf32, #tpu.memory_space<vmem>>, %arg7: memref<1x128xf32, #tpu.memory_space<vmem>>, %arg8: memref<1x2x128xf32, #tpu.memory_space<vmem>>, %arg9: memref<2x4x128xf32, #tpu.memory_space<vmem>>) attributes {dimension_semantics = [#tpu.dimension_semantics<parallel>, #tpu.dimension_semantics<arbitrary>], iteration_bounds = array<i64: 1, 1>, scalar_prefetch = 0 : i64, scratch_operands = 1 : i64, tpu.core_type = #tpu.core_type<tc>, window_params = [{transform_indices = @transform_0, window_bounds = array<i64: 2, 4, 256>}, {pipeline_mode = #tpu.pipeline_mode<synchronous>, transform_indices = @transform_1, window_bounds = array<i64: 4, 16>}, {pipeline_mode = #tpu.pipeline_mode<synchronous>, transform_indices = @transform_2, window_bounds = array<i64: 1, 16>}, {pipeline_mode = #tpu.pipeline_mode<synchronous>, transform_indices = @transform_3, window_bounds = array<i64: 1, 16>}, {pipeline_mode = #tpu.pipeline_mode<synchronous>, transform_indices = @transform_4, window_bounds = array<i64: 16, 128>}, {pipeline_mode = #tpu.pipeline_mode<synchronous>, transform_indices = @transform_5, window_bounds = array<i64: 1, 128>}, {transform_indices = @transform_6, window_bounds = array<i64: 1, 2, 128>}]} {
    %c0_i32 = arith.constant 0 : i32
    %0 = arith.cmpi eq, %arg1, %c0_i32 : i32
    %1 = arith.extui %0 : i1 to i32
    %c0_i32_0 = arith.constant 0 : i32
    %2 = arith.cmpi ne, %1, %c0_i32_0 : i32
    scf.if %2 {
      %cst = arith.constant 0.000000e+00 : f32
      %14 = vector.broadcast %cst : f32 to vector<2x4x128xf32>
      %c0_19 = arith.constant 0 : index
      %c0_20 = arith.constant 0 : index
      %c0_21 = arith.constant 0 : index
      %15 = vector.load %arg9[%c0_19, %c0_20, %c0_21] : memref<2x4x128xf32, #tpu.memory_space<vmem>>, vector<2x4x128xf32>
      tpu.vector_store %arg9[%c0_19, %c0_20, %c0_21], %14 {strides = array<i32>} : memref<2x4x128xf32, #tpu.memory_space<vmem>>, vector<2x4x128xf32>,
    } else {
    }
    %c0 = arith.constant 0 : index
    %c0_1 = arith.constant 0 : index
    %c0_2 = arith.constant 0 : index
    %3 = vector.load %arg9[%c0, %c0_1, %c0_2] : memref<2x4x128xf32, #tpu.memory_space<vmem>>, vector<2x4x128xf32>
    %c0_3 = arith.constant 0 : index
    %c0_4 = arith.constant 0 : index
    %c0_5 = arith.constant 0 : index
    %4 = vector.load %arg2[%c0_3, %c0_4, %c0_5] : memref<2x4x256xf32, #tpu.memory_space<vmem>>, vector<2x4x128xf32>
    %5 = arith.addf %3, %4 : vector<2x4x128xf32>
    %c0_6 = arith.constant 0 : index
    %c0_7 = arith.constant 0 : index
    %c0_8 = arith.constant 0 : index
    %6 = vector.load %arg9[%c0_6, %c0_7, %c0_8] : memref<2x4x128xf32, #tpu.memory_space<vmem>>, vector<2x4x128xf32>
    tpu.vector_store %arg9[%c0_6, %c0_7, %c0_8], %5 {strides = array<i32>} : memref<2x4x128xf32, #tpu.memory_space<vmem>>, vector<2x4x128xf32>,
    %c0_9 = arith.constant 0 : index
    %c0_10 = arith.constant 0 : index
    %c0_11 = arith.constant 0 : index
    %7 = vector.load %arg9[%c0_9, %c0_10, %c0_11] : memref<2x4x128xf32, #tpu.memory_space<vmem>>, vector<2x4x128xf32>
    %c0_12 = arith.constant 0 : index
    %c0_13 = arith.constant 0 : index
    %c128 = arith.constant 128 : index
    %8 = vector.load %arg2[%c0_12, %c0_13, %c128] : memref<2x4x256xf32, #tpu.memory_space<vmem>>, vector<2x4x128xf32>
    %9 = arith.addf %7, %8 : vector<2x4x128xf32>
    %c0_14 = arith.constant 0 : index
    %c0_15 = arith.constant 0 : index
    %c0_16 = arith.constant 0 : index
    %10 = vector.load %arg9[%c0_14, %c0_15, %c0_16] : memref<2x4x128xf32, #tpu.memory_space<vmem>>, vector<2x4x128xf32>
    tpu.vector_store %arg9[%c0_14, %c0_15, %c0_16], %9 {strides = array<i32>} : memref<2x4x128xf32, #tpu.memory_space<vmem>>, vector<2x4x128xf32>,
    %c0_i32_17 = arith.constant 0 : i32
    %11 = arith.cmpi eq, %arg1, %c0_i32_17 : i32
    %12 = arith.extui %11 : i1 to i32
    %c0_i32_18 = arith.constant 0 : i32
    %13 = arith.cmpi ne, %12, %c0_i32_18 : i32
    scf.if %13 {
      %c0_19 = arith.constant 0 : index
      %c0_20 = arith.constant 0 : index
      %c0_21 = arith.constant 0 : index
      %14 = vector.load %arg9[%c0_19, %c0_20, %c0_21] : memref<2x4x128xf32, #tpu.memory_space<vmem>>, vector<2x4x128xf32>
      %cst = arith.constant dense<0.000000e+00> : vector<2x4xf32>
      %15 = vector.multi_reduction <add>, %14, %cst [2] : vector<2x4x128xf32> to vector<2x4xf32>
      %cst_22 = arith.constant 3.906250e-03 : f32
      %16 = vector.broadcast %cst_22 : f32 to vector<2x4xf32>
      %17 = arith.mulf %15, %16 : vector<2x4xf32>
      %c0_23 = arith.constant 0 : index
      %c0_24 = arith.constant 0 : index
      %18 = vector.load %arg3[%c0_23, %c0_24] : memref<4x16xf32, #tpu.memory_space<vmem>>, vector<4x16xf32>
      %cst_25 = arith.constant dense<0.000000e+00> : vector<2x16xf32>
      %19 = tpu.matmul %17, %18, %cst_25 {dimension_numbers = #tpu.dot_dimension_numbers<[1], [0], [0], [1], [0, 0, 1, 1], [], []>} : vector<2x4xf32>, vector<4x16xf32>, vector<2x16xf32> -> vector<2x16xf32>
      %c0_26 = arith.constant 0 : index
      %c0_27 = arith.constant 0 : index
      %20 = vector.load %arg4[%c0_26, %c0_27] : memref<1x16xf32, #tpu.memory_space<vmem>>, vector<1x16xf32>
      %21 = vector.broadcast %20 : vector<1x16xf32> to vector<2x16xf32>
      %22 = arith.mulf %19, %21 : vector<2x16xf32>
      %c0_28 = arith.constant 0 : index
      %c0_29 = arith.constant 0 : index
      %23 = vector.load %arg5[%c0_28, %c0_29] : memref<1x16xf32, #tpu.memory_space<vmem>>, vector<1x16xf32>
      %24 = vector.broadcast %23 : vector<1x16xf32> to vector<2x16xf32>
      %25 = arith.addf %22, %24 : vector<2x16xf32>
      %cst_30 = arith.constant 0.000000e+00 : f32
      %26 = vector.broadcast %cst_30 : f32 to vector<2x16xf32>
      %27 = arith.maximumf %25, %26 : vector<2x16xf32>
      %c0_31 = arith.constant 0 : index
      %c0_32 = arith.constant 0 : index
      %28 = vector.load %arg6[%c0_31, %c0_32] : memref<16x128xf32, #tpu.memory_space<vmem>>, vector<16x128xf32>
      %cst_33 = arith.constant dense<0.000000e+00> : vector<2x128xf32>
      %29 = tpu.matmul %27, %28, %cst_33 {dimension_numbers = #tpu.dot_dimension_numbers<[1], [0], [0], [1], [0, 0, 1, 1], [], []>} : vector<2x16xf32>, vector<16x128xf32>, vector<2x128xf32> -> vector<2x128xf32>
      %c0_34 = arith.constant 0 : index
      %c0_35 = arith.constant 0 : index
      %30 = vector.load %arg7[%c0_34, %c0_35] : memref<1x128xf32, #tpu.memory_space<vmem>>, vector<1x128xf32>
      %31 = vector.broadcast %30 : vector<1x128xf32> to vector<2x128xf32>
      %32 = arith.addf %29, %31 : vector<2x128xf32>
      %cst_36 = arith.constant 1.000000e+00 : f32
      %33 = vector.broadcast %cst_36 : f32 to vector<2x128xf32>
      %34 = arith.mulf %32, %33 : vector<2x128xf32>
      %35 = arith.negf %34 : vector<2x128xf32>
      %36 = math.exp %35 : vector<2x128xf32>
      %cst_37 = arith.constant 1.000000e+00 : f32
      %37 = vector.broadcast %cst_37 : f32 to vector<2x128xf32>
      %38 = arith.addf %37, %36 : vector<2x128xf32>
      %39 = arith.divf %37, %38 : vector<2x128xf32>
      %40 = tpu.iota {dimensions = array<i32: 1>} : vector<2x128xi32>
      %c21_i32 = arith.constant 21 : i32
      %41 = vector.broadcast %c21_i32 : i32 to vector<2x128xi32>
      %42 = arith.cmpi sge, %40, %41 : vector<2x128xi32>
      %c25_i32 = arith.constant 25 : i32
      %43 = vector.broadcast %c25_i32 : i32 to vector<2x128xi32>
      %44 = arith.cmpi slt, %40, %43 : vector<2x128xi32>
      %45 = arith.andi %42, %44 : vector<2x128xi1>
      %cst_38 = arith.constant -1.000000e+30 : f32
      %46 = vector.broadcast %cst_38 : f32 to vector<2x128xf32>
      %47 = arith.select %45, %34, %46 : vector<2x128xi1>, vector<2x128xf32>
      %cst_39 = arith.constant dense<0xFF800000> : vector<2xf32>
      %48 = vector.multi_reduction <maximumf>, %47, %cst_39 [1] : vector<2x128xf32> to vector<2xf32>
      %49 = vector.shape_cast %48 : vector<2xf32> to vector<2x1xf32>
      %50 = vector.broadcast %49 : vector<2x1xf32> to vector<2x128xf32>
      %51 = arith.subf %47, %50 : vector<2x128xf32>
      %52 = math.exp %51 : vector<2x128xf32>
      %cst_40 = arith.constant dense<0.000000e+00> : vector<2xf32>
      %53 = vector.multi_reduction <add>, %52, %cst_40 [1] : vector<2x128xf32> to vector<2xf32>
      %54 = vector.shape_cast %53 : vector<2xf32> to vector<2x1xf32>
      %55 = vector.broadcast %54 : vector<2x1xf32> to vector<2x128xf32>
      %56 = arith.divf %52, %55 : vector<2x128xf32>
      %57 = arith.select %45, %56, %39 : vector<2x128xi1>, vector<2x128xf32>
      %c0_41 = arith.constant 0 : index
      %c0_42 = arith.constant 0 : index
      %c0_43 = arith.constant 0 : index
      %58 = vector.load %arg8[%c0_41, %c0_42, %c0_43] : memref<1x2x128xf32, #tpu.memory_space<vmem>>, vector<1x2x128xf32>
      %59 = vector.shape_cast %58 : vector<1x2x128xf32> to vector<2x128xf32>
      %60 = vector.shape_cast %57 : vector<2x128xf32> to vector<1x2x128xf32>
      tpu.vector_store %arg8[%c0_41, %c0_42, %c0_43], %60 {strides = array<i32>} : memref<1x2x128xf32, #tpu.memory_space<vmem>>, vector<1x2x128xf32>,
    } else {
    }
    return
  }
  func.func @transform_0(%arg0: i32, %arg1: i32) -> (i32, i32, i32) {
    %c0_i32 = arith.constant 0 : i32
    %c0_i32_0 = arith.constant 0 : i32
    return %arg0, %c0_i32, %arg1 : i32, i32, i32
  }
  func.func @transform_1(%arg0: i32, %arg1: i32) -> (i32, i32) {
    %c0_i32 = arith.constant 0 : i32
    %c0_i32_0 = arith.constant 0 : i32
    %c0_i32_1 = arith.constant 0 : i32
    return %c0_i32, %c0_i32_0 : i32, i32
  }
  func.func @transform_2(%arg0: i32, %arg1: i32) -> (i32, i32) {
    %c0_i32 = arith.constant 0 : i32
    %c0_i32_0 = arith.constant 0 : i32
    %c0_i32_1 = arith.constant 0 : i32
    return %c0_i32, %c0_i32_0 : i32, i32
  }
  func.func @transform_3(%arg0: i32, %arg1: i32) -> (i32, i32) {
    %c0_i32 = arith.constant 0 : i32
    %c0_i32_0 = arith.constant 0 : i32
    %c0_i32_1 = arith.constant 0 : i32
    return %c0_i32, %c0_i32_0 : i32, i32
  }
  func.func @transform_4(%arg0: i32, %arg1: i32) -> (i32, i32) {
    %c0_i32 = arith.constant 0 : i32
    %c0_i32_0 = arith.constant 0 : i32
    %c0_i32_1 = arith.constant 0 : i32
    return %c0_i32, %c0_i32_0 : i32, i32
  }
  func.func @transform_5(%arg0: i32, %arg1: i32) -> (i32, i32) {
    %c0_i32 = arith.constant 0 : i32
    %c0_i32_0 = arith.constant 0 : i32
    %c0_i32_1 = arith.constant 0 : i32
    return %c0_i32, %c0_i32_0 : i32, i32
  }
  func.func @transform_6(%arg0: i32, %arg1: i32) -> (i32, i32, i32) {
    %c0_i32 = arith.constant 0 : i32
    %c0_i32_0 = arith.constant 0 : i32
    %c0_i32_1 = arith.constant 0 : i32
    return %arg0, %c0_i32, %c0_i32_0 : i32, i32, i32
  }
}

</mosaic_0001>

<bundles_post_ra>
// kernel: tpu_custom_call.1
= control target key start
LH: loop header
LB: loop body
LE: loop exit
PB: predicated region body
PF: predicated region fallthrough
CT: control target
= control target key end

     0   :  { %11 = vsyncpa [#allocation4], 0  ;;  %s528_s0 = inlined_call_operand.hbm [shape: f32[2,4,256], index: 0, kind: input, shape index: {}]   ;;  %s529_s1 = inlined_call_operand.hbm [shape: f32[4,16], index: 1, kind: input, shape index: {}]   ;;  %s530_s2 = inlined_call_operand.vmem [shape: f32[1,16], index: 2, kind: input, shape index: {}]   ;;  %s531_s3 = inlined_call_operand.vmem [shape: f32[1,16], index: 3, kind: input, shape index: {}]   ;;  %s532_s4 = inlined_call_operand.hbm [shape: f32[16,128], index: 4, kind: input, shape index: {}]   ;;  %s533_s5 = inlined_call_operand.vmem [shape: f32[1,128], index: 5, kind: input, shape index: {}]   ;;  %s534_s6 = inlined_call_operand.hbm [shape: f32[1,2,128], index: 6, kind: output, shape index: {}]  }
   0x1   :  { %12 = vsyncpa [#allocation7], 0 }
   0x2   :  { %13 = vsyncpa [#allocation5], 0  ;;  %s456_s21 = smov [#allocation6]   ;;  %s457_s23 = smov [#allocation3]  }
   0x3   :  { %s32_s22 = sshll.u32 %s456_s21, 4  ;;  %s19_s24 = sshll.u32 %s457_s23, 4  ;;  %s33_s22 = int_to_ptr.vmem [resolvable:$true] %s32_s22  ;;  %s20_s24 = int_to_ptr.vmem [resolvable:$true] %s19_s24 }
   0x4   :  { %s378_s25 = scalar_lea.vmem %s33_s22, 64  ;;  %p383_p1 = scmp.lt.s32.totalorder %s33_s22, %s33_s22 }
   0x5   :  { %p379_p0 = scmp.ne.s32.totalorder %s33_s22, %s378_s25  ;;  %p384_p2 = scmp.lt.s32.totalorder %s378_s25, %s378_s25 }
   0x7   :  { %p385_p3 = por %p384_p2, %p383_p1 }
   0x9   :  { %p386_p4 = pnand %p385_p3, %p379_p0 }
   0xb   :  { %389 = shalt.err (!%p386_p4)
}
   0xc   :  { %35 = dma.hbm_to_vmem [thread:$0]  %s529_s1, 64, %s33_s22, [#allocation7]  }
   0xd   :  { %s398_s28 = scalar_lea.vmem %s20_s24, 256  ;;  %p403_p6 = scmp.lt.s32.totalorder %s20_s24, %s20_s24 }
   0xe   :  { %p399_p5 = scmp.ne.s32.totalorder %s20_s24, %s398_s28  ;;  %p404_p7 = scmp.lt.s32.totalorder %s398_s28, %s398_s28 }
  0x10   :  { %p405_p8 = por %p404_p7, %p403_p6 }
  0x12   :  { %p406_p9 = pnand %p405_p8, %p399_p5 }
  0x14   :  { %409 = shalt.err (!%p406_p9)
}
  0x15   :  { %s458_s29 = smov 128   ;;  %s459_s30 = smov 8  }
  0x16   :  { %25 = dma.hbm_to_vmem [thread:$0]  %s528_s0, 256, %s20_s24, [#allocation4], %s458_s29, %s458_s29, %s459_s30  }
  0x17   :  { %s460_s9 = smov [#allocation8]  }
  0x18   :  { %s45_s10 = sshll.u32 %s460_s9, 4  ;;  %s46_s10 = int_to_ptr.vmem [resolvable:$true] %s45_s10 }
  0x19   :  { %s418_s11 = scalar_lea.vmem %s46_s10, 256  ;;  %p423_p11 = scmp.lt.s32.totalorder %s46_s10, %s46_s10 }
  0x1a   :  { %p419_p10 = scmp.ne.s32.totalorder %s46_s10, %s418_s11  ;;  %p424_p12 = scmp.lt.s32.totalorder %s418_s11, %s418_s11 }
  0x1c   :  { %p425_p13 = por %p424_p12, %p423_p11 }
  0x1e   :  { %p426_p0 = pnand %p425_p13, %p419_p10 }
  0x20   :  { %429 = shalt.err (!%p426_p0)
}
  0x21   :  { %51 = dma.hbm_to_vmem [thread:$0]  %s532_s4, 256, %s46_s10, [#allocation7], %s458_s29, %s458_s29, %s459_s30  }
  0x22   :  { %450 = dma.done.wait [#allocation4], 256  }
  0x23   :  { %451 = vsyncadd [#allocation4], 4294967040 }
  0x24   :  { %452 = dma.done.wait [#allocation7], 320  }
  0x25   :  { %453 = vsyncadd [#allocation7], 4294966976  ;;  %v461_v0 = vmov 0.0   ;;  %v71_v1 = vld [vmem:[#allocation3] sm:$0xf]  ;;  %vm90_vm0 = vcmask 1043456   ;;  %v102_v18 = vlaneseq }
  0x26   :  { %67 = vst [vmem:[#allocation2] sm:$0xf] %v461_v0  ;;  %68 = vst [vmem:[#allocation2 + $0x4] sm:$0xf] %v461_v0  ;;  %342 = vmatprep.subr.mxu0 %v461_v0  ;;  %347 = vmatprep.subr.mxu1 %v461_v0  ;;  %v72_v2 = vld [vmem:[#allocation3 + $0x8] sm:$0xf] }
  0x27   :  { %v79_v7 = vld [vmem:[#allocation3 + $0x4] sm:$0xf]  ;;  %v80_v8 = vld [vmem:[#allocation3 + $0xc] sm:$0xf]  ;;  %v99_v17 = vld [vmem:[#allocation6] sm:$0xf] }
  0x28   :  { %343 = vmatpush3.msk.msra.mxu0 %vm90_vm0, %v99_v17  ;;  %vm462_vm1 = vmmov 0   ;;  %v103_v19 = vand.u32 127, %v102_v18  ;;  %v105_v20 = vshrl.u32 %v102_v18, 7  ;;  %vm112_vm2 = vcmask 1041409   ;;  %v208_v29 = vld [vmem:[#allocation8 + $0x8] sm:$0xff]  ;;  %v207_v30 = vld [vmem:[#allocation8] sm:$0xff] }
  0x29   :  { %344 = vmatprep.mubr.msk.f32.mxu0 %vm462_vm1, %v461_v0  ;;  %351 = vmatprep.mubr.msk.f32.mxu1 %vm462_vm1, %v461_v0  ;;  %vm114_vm3 = vcmask 31744   ;;  %v332_v31 = vld [vmem:[%s530_s2] ss:$0 sm:$0xff]  ;;  %vm216_vm4 = vcmask 130048   ;;  %vm300_vm8 = vcmask 1041408   ;;  %s463_s2 = smov [#allocation9]  }
  0x2a   :  { %v106_v22 = vsub.s32 %v103_v19, %v105_v20  ;;  %348 = vmatpush3.msra.mxu1 %v208_v29  ;;  %v333_v33 = vld [vmem:[%s531_s3] ss:$0 sm:$0xff]  ;;  %vm296_vm5 = vcmp.ge.s32.totalorder %v103_v19, 21  ;;  %vm297_vm6 = vcmp.lt.s32.totalorder %v103_v19, 25  ;;  %s320_s3 = sshll.u32 %s463_s2, 4  ;;  %s321_s3 = int_to_ptr.vmem [resolvable:$true] %s320_s3 }
  0x2b   :  { %349 = vmatprep.subr.mxu1 %v461_v0  ;;  %v334_v38 = vld [vmem:[%s533_s5] ss:$0 sm:$0xff]  ;;  %vm517_vm7 = vmand %vm296_vm5, %vm297_vm6  ;;  %s430_s5 = scalar_lea.vmem %s321_s3, 32  ;;  %p435_p2 = scmp.lt.s32.totalorder %s321_s3, %s321_s3 }
  0x2c   :  { %350 = vmatpush3.msra.mxu1 %v207_v30  ;;  %p431_p1 = scmp.ne.s32.totalorder %s321_s3, %s430_s5  ;;  %p436_p3 = scmp.lt.s32.totalorder %s430_s5, %s430_s5 }
  0x2d   :  { %v69_v3 = vld [vmem:[#allocation2] sm:$0xf]  ;;  %v70_v4 = vld [vmem:[#allocation2 + $0x4] sm:$0xf] }
  0x2e   :  { %v73_v5 = vadd.f32 %v71_v1, %v69_v3  ;;  %v74_v6 = vadd.f32 %v72_v2, %v70_v4  ;;  %p437_p4 = por %p436_p3, %p435_p2 }
  0x30   :  { %75 = vst [vmem:[#allocation2] sm:$0xf] %v73_v5  ;;  %76 = vst [vmem:[#allocation2 + $0x4] sm:$0xf] %v74_v6  ;;  %p438_p5 = pnand %p437_p4, %p431_p1 }
  0x37   :  { %v77_v9 = vld [vmem:[#allocation2] sm:$0xf]  ;;  %v78_v10 = vld [vmem:[#allocation2 + $0x4] sm:$0xf] }
  0x38   :  { %v81_v11 = vadd.f32 %v79_v7, %v77_v9  ;;  %v82_v12 = vadd.f32 %v80_v8, %v78_v10 }
  0x3a   :  { %83 = vst [vmem:[#allocation2] sm:$0xf] %v81_v11  ;;  %84 = vst [vmem:[#allocation2 + $0x4] sm:$0xf] %v82_v12 }
  0x41   :  { %v88_v13 = vld [vmem:[#allocation2] sm:$0xf]  ;;  %v89_v14 = vld [vmem:[#allocation2 + $0x4] sm:$0xf] }
  0x42   :  { %v91_v15 = vsel %vm90_vm0, %v88_v13, 0.0  ;;  %v94_v16 = vsel %vm90_vm0, %v89_v14, 0.0 }
  0x43   :  { %92 = vadd.xlane.f32.xlu0 %v91_v15 }
  0x47   :  { %95 = vadd.xlane.f32.xlu0 %v94_v16 }
  0xcc   :  { %v93_v21 = vpop.xlane.xlu0 %92 }
  0xcd   :  { %v97_v23 = vmul.f32 0.00390625, %v93_v21 }
  0xcf   :  { %v107_v26 = vrot.slane %v97_v23, %v106_v22 }
  0xd0   :  { %v96_v24 = vpop.xlane.xlu0 %95 }
  0xd1   :  { %v98_v25 = vmul.f32 0.00390625, %v96_v24 }
  0xd3   :  { %v111_v27 = vrot.slane %v98_v25, %v106_v22 }
  0xd5   :  { %v113_v28 = vsel %vm112_vm2, %v111_v27, %v107_v26 }
  0xd6   :  { %345 = vmatmul.mubr.msk.f32.vlgmr.msra.gmra.mxu0 %vm114_vm3, %v113_v28 }
 0x196   :  { %v186_v32 = vpop.f32.mrf.mxu0 }
 0x197   :  { %v197_v34 = vmul.f32 %v332_v31, %v186_v32 }
 0x198   :  { %v346_v35 = vpop.f32.mrf.mxu0 }
 0x199   :  { %v205_v36 = vadd.f32 %v333_v33, %v197_v34 }
 0x19b   :  { %v206_v37 = vmax.f32 %v205_v36, 0.0 }
 0x19d   :  { %352 = vmatmul.mubr.msk.f32.vlgmr.msra.gmra.mxu1 %vm216_vm4, %v206_v37 }
 0x25d   :  { %v286_v39 = vpop.f32.mrf.mxu1 }
 0x25e   :  { %v287_v41 = vadd.f32 %v334_v38, %v286_v39 }
 0x25f   :  { %v353_v42 = vpop.f32.mrf.mxu1 }
 0x260   :  { %v299_v43 = vsel %vm517_vm7, %v287_v41, -1e+30  ;;  %v336_v50 = vmul.f32 -1.442695, %v287_v41 }
 0x261   :  { %v301_v44 = vsel %vm300_vm8, %v299_v43, -inf }
 0x262   :  { %302 = vmax.xlane.f32.xlu1 %v301_v44 }
 0x2eb   :  { %v303_v45 = vpop.xlane.xlu1 %302 }
 0x2ec   :  { %v304_v46 = vsub.f32 %v299_v43, %v303_v45 }
 0x2ee   :  { %v305_v47 = vmul.f32 1.442695, %v304_v46 }
 0x2f0   :  { %362 = vpow2.f32 %v305_v47 }
 0x2f1   :  { %364 = vpow2.f32 %v336_v50 }
 0x2fd   :  { %v363_v48 = vpop.eup %362 }
 0x2fe   :  { %v307_v49 = vsel %vm300_vm8, %v363_v48, 0.0  ;;  %v365_v51 = vpop.eup %364 }
 0x2ff   :  { %308 = vadd.xlane.f32.xlu1 %v307_v49  ;;  %v293_v52 = vadd.f32 1.0, %v365_v51 }
 0x388   :  { %v309_v53 = vpop.xlane.xlu1 %308 }
 0x389   :  { %366 = vrcp.f32 %v309_v53 }
 0x38a   :  { %368 = vrcp.f32 %v293_v52 }
 0x396   :  { %v367_v54 = vpop.eup %366 }
 0x397   :  { %v311_v55 = vmul.f32 %v367_v54, %v363_v48  ;;  %v369_v56 = vpop.eup %368 }
 0x399   :  { %v312_v57 = vsel %vm517_vm7, %v311_v55, %v369_v56 }
 0x39a   :  { %313 = vst [vmem:[#allocation9] sm:$0x3] %v312_v57 }
 0x39b   :  { %441 = shalt.err (!%p438_p5)
}
 0x39c   :  { %323 = dma.vmem_to_hbm [thread:$0]  %s321_s3, 32, %s534_s6, [#allocation5]  }
 0x39d   :  { %454 = dma.done.wait [#allocation5], 32  }
 0x39e   :  { %455 = vsyncadd [#allocation5], 4294967264 }
 0x39f   :  { %327 = vsyncpa [#allocation4], 1 }
 0x3a0   :  { %328 = vsyncpa [#allocation7], 1 }
 0x3a1   :  { %329 = vsyncpa [#allocation5], 1 }

</bundles_post_ra>
